<compile_context>
chip_gen: v6e
topology: v6e:2x2x1
jax: 0.10.0
libtpu: 0.0.40
codegen_flags: <defaults>
</compile_context>

<pallas_src>
import math
import functools

import jax
import jax.numpy as jnp
from jax import lax
from jax.experimental import pallas as pl
from jax.experimental.pallas import tpu as pltpu


def _self_attention_kernel(x_ref, wqkv_ref, bqkv_ref, wp_ref, bp_ref, o_ref,
                           *, num_heads, head_dim, block_b, n_tok, emb):
    H, D, Bb, N, E = num_heads, head_dim, block_b, n_tok, emb
    M = Bb * N

    # Flatten the batch block into the row (sublane) dimension; all projections
    # then run as (M, E) x (E, D) matmuls.  (Merging leading dims is layout-free.)
    x2d = x_ref[...].reshape(M, E).astype(jnp.float32)
    scale = 1.0 / math.sqrt(D)

    # Output projection is folded into a per-head accumulation -> no concat.
    acc = jnp.zeros((M, E), jnp.float32)

    for h in range(H):  # static unroll; H is small
        # Per-head projections: weights already transposed + sliced on the host,
        # so the matmul writes the (M, D) head tile directly (no lane slicing).
        qh = jnp.dot(x2d, wqkv_ref[h],
                     preferred_element_type=jnp.float32) + bqkv_ref[h]
        kh = jnp.dot(x2d, wqkv_ref[H + h],
                     preferred_element_type=jnp.float32) + bqkv_ref[H + h]
        vh = jnp.dot(x2d, wqkv_ref[2 * H + h],
                     preferred_element_type=jnp.float32) + bqkv_ref[2 * H + h]

        # Attention is per batch element: slice rows (sublane dim, N multiple of 8).
        oh_rows = []
        for b in range(Bb):
            sl = slice(b * N, (b + 1) * N)
            qb, kb, vb = qh[sl], kh[sl], vh[sl]
            # Contract the head dim of q and k directly (no explicit transpose op).
            att = lax.dot_general(qb, kb, (((1,), (1,)), ((), ())),
                                  preferred_element_type=jnp.float32) * scale
            att = att - jnp.max(att, axis=-1, keepdims=True)
            att = jnp.exp(att)
            denom = jnp.sum(att, axis=-1, keepdims=True)
            att = att * pl.reciprocal(denom, approx=True)   # EUP slot, ~free
            oh_rows.append(jnp.dot(att, vb, preferred_element_type=jnp.float32))
        oh = oh_rows[0] if Bb == 1 else jnp.concatenate(oh_rows, axis=0)  # (M, D)

        # out += o_h @ Wp_h   (per-head slice of the output projection)
        acc = acc + jnp.dot(oh, wp_ref[h], preferred_element_type=jnp.float32)

    out = acc + bp_ref[...]                                   # (1, E) broadcast
    o_ref[...] = out.reshape(Bb, N, E).astype(o_ref.dtype)


def pack_params(params, num_heads):
    """Host-side re-pack of PyTorch-convention Linear weights (out, in)."""
    wq, bq, wk, bk, wv, bv, wp, bp = params
    E = wq.shape[0]
    H = num_heads
    D = E // H

    def per_head_t(w):
        # (E_out, E_in) -> (H, E_in, D): x @ per_head_t(w)[h] == (x @ w.T)[:, hD:(h+1)D]
        return jnp.transpose(w.reshape(H, D, E), (0, 2, 1))

    wqkv = jnp.concatenate([per_head_t(wq), per_head_t(wk), per_head_t(wv)],
                           axis=0)                              # (3H, E, D)
    bqkv = jnp.concatenate([bq, bk, bv]).reshape(3 * H, 1, D)   # (3H, 1, D)
    # out = sum_h o_h @ wp[:, hD:(h+1)D].T + bp
    wp_heads = jnp.transpose(wp.reshape(E, H, D), (1, 2, 0))    # (H, D, E)
    return wqkv, bqkv, wp_heads, bp.reshape(1, E)


def self_attention(x, params, num_heads, block_b=None):
    B, N, E = x.shape
    H = num_heads
    assert E % H == 0
    D = E // H

    if block_b is None:
        # Amortize per-grid-step overhead, but keep >= 2 grid steps when B >= 2
        # so both v7x TensorCores receive work via the parallel batch axis.
        block_b = 1
        for cand in (8, 4, 2):
            if B % cand == 0 and B // cand >= 2:
                block_b = cand
                break
    assert B % block_b == 0

    wqkv, bqkv, wp_heads, bp2 = pack_params(params, num_heads)

    kernel = functools.partial(
        _self_attention_kernel,
        num_heads=H, head_dim=D, block_b=block_b, n_tok=N, emb=E)

    grid = (B // block_b,)
    return pl.pallas_call(
        kernel,
        out_shape=jax.ShapeDtypeStruct((B, N, E), x.dtype),
        grid=grid,
        in_specs=[
            pl.BlockSpec((block_b, N, E), lambda b: (b, 0, 0)),   # x
            pl.BlockSpec((3 * H, E, D), lambda b: (0, 0, 0)),     # fused qkv weights
            pl.BlockSpec((3 * H, 1, D), lambda b: (0, 0, 0)),     # fused qkv biases
            pl.BlockSpec((H, D, E), lambda b: (0, 0, 0)),         # per-head proj weights
            pl.BlockSpec((1, E), lambda b: (0, 0)),               # proj bias
        ],
        out_specs=pl.BlockSpec((block_b, N, E), lambda b: (b, 0, 0)),
        compiler_params=pltpu.CompilerParams(
            dimension_semantics=("parallel",)),
    )(x, wqkv, bqkv, wp_heads, bp2)


def reference_self_attention(x, params, num_heads):
    """Pure-JAX replica of the PyTorch forward (for verification)."""
    wq, bq, wk, bk, wv, bv, wp, bp = params
    B, N, E = x.shape
    D = E // num_heads
    q = x @ wq.T + bq
    k = x @ wk.T + bk
    v = x @ wv.T + bv
    q = q.reshape(B, N, num_heads, D).transpose(0, 2, 1, 3)
    k = k.reshape(B, N, num_heads, D).transpose(0, 2, 1, 3)
    v = v.reshape(B, N, num_heads, D).transpose(0, 2, 1, 3)
    att = (q @ jnp.swapaxes(k, -2, -1)) * (1.0 / math.sqrt(D))
    att = jax.nn.softmax(att, axis=-1)
    out = att @ v
    out = out.transpose(0, 2, 1, 3).reshape(B, N, E)
    return out @ wp.T + bp


def init_params(key, embedding_dims):
    """Deterministic init mimicking nn.Linear default (uniform +/- 1/sqrt(fan_in))."""
    E = embedding_dims
    bound = 1.0 / math.sqrt(E)
    keys = jax.random.split(key, 8)
    wq = jax.random.uniform(keys[0], (E, E), jnp.float32, -bound, bound)
    bq = jax.random.uniform(keys[1], (E,), jnp.float32, -bound, bound)
    wk = jax.random.uniform(keys[2], (E, E), jnp.float32, -bound, bound)
    bk = jax.random.uniform(keys[3], (E,), jnp.float32, -bound, bound)
    wv = jax.random.uniform(keys[4], (E, E), jnp.float32, -bound, bound)
    bv = jax.random.uniform(keys[5], (E,), jnp.float32, -bound, bound)
    wp = jax.random.uniform(keys[6], (E, E), jnp.float32, -bound, bound)
    bp = jax.random.uniform(keys[7], (E,), jnp.float32, -bound, bound)
    return (wq, bq, wk, bk, wv, bv, wp, bp)


if __name__ == "__main__":
    # Module config: shape2d=(4,4) -> N=16 tokens, embedding_dims=32, num_heads=4,
    # no relative positional bias, no class token.
    B, N, E, H = 2, 16, 32, 4

    key = jax.random.PRNGKey(0)
    key_x, key_p = jax.random.split(key)
    x = jax.random.normal(key_x, (B, N, E), dtype=jnp.float32)
    params = init_params(key_p, E)

    out = jax.block_until_ready(self_attention(x, params, num_heads=H))
    ref = reference_self_attention(x, params, num_heads=H)

    assert out.shape == (B, N, E)
    # approx=True reciprocal (EUP) carries ~2^-12 relative error in the softmax
    # denominator, so verify at 1e-3 rather than 1e-4.
    assert jnp.allclose(out, ref, atol=1e-3, rtol=1e-3), "mismatch vs reference"

    print("KERNEL_OK")
</pallas_src>

<mosaic_0001>
module attributes {stable_mosaic.version = 11 : i64} {
  func.func @_self_attention_kernel(%arg0: i32, %arg1: memref<1x16x32xf32, #tpu.memory_space<vmem>>, %arg2: memref<12x32x8xf32, #tpu.memory_space<vmem>>, %arg3: memref<12x1x8xf32, #tpu.memory_space<vmem>>, %arg4: memref<4x8x32xf32, #tpu.memory_space<vmem>>, %arg5: memref<1x32xf32, #tpu.memory_space<vmem>>, %arg6: memref<1x16x32xf32, #tpu.memory_space<vmem>>) attributes {dimension_semantics = [#tpu.dimension_semantics<parallel>], iteration_bounds = array<i64: 2>, scalar_prefetch = 0 : i64, scratch_operands = 0 : i64, tpu.core_type = #tpu.core_type<tc>, window_params = [{transform_indices = @transform_0, window_bounds = array<i64: 1, 16, 32>}, {pipeline_mode = #tpu.pipeline_mode<synchronous>, transform_indices = @transform_1, window_bounds = array<i64: 12, 32, 8>}, {pipeline_mode = #tpu.pipeline_mode<synchronous>, transform_indices = @transform_2, window_bounds = array<i64: 12, 1, 8>}, {pipeline_mode = #tpu.pipeline_mode<synchronous>, transform_indices = @transform_3, window_bounds = array<i64: 4, 8, 32>}, {pipeline_mode = #tpu.pipeline_mode<synchronous>, transform_indices = @transform_4, window_bounds = array<i64: 1, 32>}, {transform_indices = @transform_5, window_bounds = array<i64: 1, 16, 32>}]} {
    %c0 = arith.constant 0 : index
    %c0_0 = arith.constant 0 : index
    %c0_1 = arith.constant 0 : index
    %0 = vector.load %arg1[%c0, %c0_0, %c0_1] : memref<1x16x32xf32, #tpu.memory_space<vmem>>, vector<1x16x32xf32>
    %1 = vector.shape_cast %0 : vector<1x16x32xf32> to vector<16x32xf32>
    %cst = arith.constant 0.000000e+00 : f32
    %2 = vector.broadcast %cst : f32 to vector<16x32xf32>
    %c0_2 = arith.constant 0 : index
    %c0_3 = arith.constant 0 : index
    %c0_4 = arith.constant 0 : index
    %3 = vector.load %arg2[%c0_2, %c0_3, %c0_4] : memref<12x32x8xf32, #tpu.memory_space<vmem>>, vector<1x32x8xf32>
    %4 = vector.shape_cast %3 : vector<1x32x8xf32> to vector<32x8xf32>
    %cst_5 = arith.constant dense<0.000000e+00> : vector<16x8xf32>
    %5 = tpu.matmul %1, %4, %cst_5 {dimension_numbers = #tpu.dot_dimension_numbers<[1], [0], [0], [1], [0, 0, 1, 1], [], []>} : vector<16x32xf32>, vector<32x8xf32>, vector<16x8xf32> -> vector<16x8xf32>
    %c0_6 = arith.constant 0 : index
    %c0_7 = arith.constant 0 : index
    %c0_8 = arith.constant 0 : index
    %6 = vector.load %arg3[%c0_6, %c0_7, %c0_8] : memref<12x1x8xf32, #tpu.memory_space<vmem>>, vector<1x1x8xf32>
    %7 = vector.shape_cast %6 : vector<1x1x8xf32> to vector<1x8xf32>
    %8 = vector.broadcast %7 : vector<1x8xf32> to vector<16x8xf32>
    %9 = arith.addf %5, %8 : vector<16x8xf32>
    %c4 = arith.constant 4 : index
    %c0_9 = arith.constant 0 : index
    %c0_10 = arith.constant 0 : index
    %10 = vector.load %arg2[%c4, %c0_9, %c0_10] : memref<12x32x8xf32, #tpu.memory_space<vmem>>, vector<1x32x8xf32>
    %11 = vector.shape_cast %10 : vector<1x32x8xf32> to vector<32x8xf32>
    %cst_11 = arith.constant dense<0.000000e+00> : vector<16x8xf32>
    %12 = tpu.matmul %1, %11, %cst_11 {dimension_numbers = #tpu.dot_dimension_numbers<[1], [0], [0], [1], [0, 0, 1, 1], [], []>} : vector<16x32xf32>, vector<32x8xf32>, vector<16x8xf32> -> vector<16x8xf32>
    %c4_12 = arith.constant 4 : index
    %c0_13 = arith.constant 0 : index
    %c0_14 = arith.constant 0 : index
    %13 = vector.load %arg3[%c4_12, %c0_13, %c0_14] : memref<12x1x8xf32, #tpu.memory_space<vmem>>, vector<1x1x8xf32>
    %14 = vector.shape_cast %13 : vector<1x1x8xf32> to vector<1x8xf32>
    %15 = vector.broadcast %14 : vector<1x8xf32> to vector<16x8xf32>
    %16 = arith.addf %12, %15 : vector<16x8xf32>
    %c8 = arith.constant 8 : index
    %c0_15 = arith.constant 0 : index
    %c0_16 = arith.constant 0 : index
    %17 = vector.load %arg2[%c8, %c0_15, %c0_16] : memref<12x32x8xf32, #tpu.memory_space<vmem>>, vector<1x32x8xf32>
    %18 = vector.shape_cast %17 : vector<1x32x8xf32> to vector<32x8xf32>
    %cst_17 = arith.constant dense<0.000000e+00> : vector<16x8xf32>
    %19 = tpu.matmul %1, %18, %cst_17 {dimension_numbers = #tpu.dot_dimension_numbers<[1], [0], [0], [1], [0, 0, 1, 1], [], []>} : vector<16x32xf32>, vector<32x8xf32>, vector<16x8xf32> -> vector<16x8xf32>
    %c8_18 = arith.constant 8 : index
    %c0_19 = arith.constant 0 : index
    %c0_20 = arith.constant 0 : index
    %20 = vector.load %arg3[%c8_18, %c0_19, %c0_20] : memref<12x1x8xf32, #tpu.memory_space<vmem>>, vector<1x1x8xf32>
    %21 = vector.shape_cast %20 : vector<1x1x8xf32> to vector<1x8xf32>
    %22 = vector.broadcast %21 : vector<1x8xf32> to vector<16x8xf32>
    %23 = arith.addf %19, %22 : vector<16x8xf32>
    %cst_21 = arith.constant dense<0.000000e+00> : vector<16x16xf32>
    %24 = tpu.matmul %9, %16, %cst_21 {dimension_numbers = #tpu.dot_dimension_numbers<[1], [1], [0], [0], [0, 0, 1, 0], [], []>} : vector<16x8xf32>, vector<16x8xf32>, vector<16x16xf32> -> vector<16x16xf32>
    %cst_22 = arith.constant 0.353553385 : f32
    %25 = vector.broadcast %cst_22 : f32 to vector<16x16xf32>
    %26 = arith.mulf %24, %25 : vector<16x16xf32>
    %cst_23 = arith.constant dense<0xFF800000> : vector<16xf32>
    %27 = vector.multi_reduction <maximumf>, %26, %cst_23 [1] : vector<16x16xf32> to vector<16xf32>
    %28 = vector.shape_cast %27 : vector<16xf32> to vector<16x1xf32>
    %29 = vector.broadcast %28 : vector<16x1xf32> to vector<16x16xf32>
    %30 = arith.subf %26, %29 : vector<16x16xf32>
    %31 = math.exp %30 : vector<16x16xf32>
    %cst_24 = arith.constant dense<0.000000e+00> : vector<16xf32>
    %32 = vector.multi_reduction <add>, %31, %cst_24 [1] : vector<16x16xf32> to vector<16xf32>
    %33 = vector.shape_cast %32 : vector<16xf32> to vector<16x1xf32>
    %34 = tpu.reciprocal %33 {approx = true} : vector<16x1xf32> -> vector<16x1xf32>
    %35 = vector.broadcast %34 : vector<16x1xf32> to vector<16x16xf32>
    %36 = arith.mulf %31, %35 : vector<16x16xf32>
    %cst_25 = arith.constant dense<0.000000e+00> : vector<16x8xf32>
    %37 = tpu.matmul %36, %23, %cst_25 {dimension_numbers = #tpu.dot_dimension_numbers<[1], [0], [0], [1], [0, 0, 1, 1], [], []>} : vector<16x16xf32>, vector<16x8xf32>, vector<16x8xf32> -> vector<16x8xf32>
    %c0_26 = arith.constant 0 : index
    %c0_27 = arith.constant 0 : index
    %c0_28 = arith.constant 0 : index
    %38 = vector.load %arg4[%c0_26, %c0_27, %c0_28] : memref<4x8x32xf32, #tpu.memory_space<vmem>>, vector<1x8x32xf32>
    %39 = vector.shape_cast %38 : vector<1x8x32xf32> to vector<8x32xf32>
    %cst_29 = arith.constant dense<0.000000e+00> : vector<16x32xf32>
    %40 = tpu.matmul %37, %39, %cst_29 {dimension_numbers = #tpu.dot_dimension_numbers<[1], [0], [0], [1], [0, 0, 1, 1], [], []>} : vector<16x8xf32>, vector<8x32xf32>, vector<16x32xf32> -> vector<16x32xf32>
    %41 = arith.addf %2, %40 : vector<16x32xf32>
    %c1 = arith.constant 1 : index
    %c0_30 = arith.constant 0 : index
    %c0_31 = arith.constant 0 : index
    %42 = vector.load %arg2[%c1, %c0_30, %c0_31] : memref<12x32x8xf32, #tpu.memory_space<vmem>>, vector<1x32x8xf32>
    %43 = vector.shape_cast %42 : vector<1x32x8xf32> to vector<32x8xf32>
    %cst_32 = arith.constant dense<0.000000e+00> : vector<16x8xf32>
    %44 = tpu.matmul %1, %43, %cst_32 {dimension_numbers = #tpu.dot_dimension_numbers<[1], [0], [0], [1], [0, 0, 1, 1], [], []>} : vector<16x32xf32>, vector<32x8xf32>, vector<16x8xf32> -> vector<16x8xf32>
    %c1_33 = arith.constant 1 : index
    %c0_34 = arith.constant 0 : index
    %c0_35 = arith.constant 0 : index
    %45 = vector.load %arg3[%c1_33, %c0_34, %c0_35] : memref<12x1x8xf32, #tpu.memory_space<vmem>>, vector<1x1x8xf32>
    %46 = vector.shape_cast %45 : vector<1x1x8xf32> to vector<1x8xf32>
    %47 = vector.broadcast %46 : vector<1x8xf32> to vector<16x8xf32>
    %48 = arith.addf %44, %47 : vector<16x8xf32>
    %c5 = arith.constant 5 : index
    %c0_36 = arith.constant 0 : index
    %c0_37 = arith.constant 0 : index
    %49 = vector.load %arg2[%c5, %c0_36, %c0_37] : memref<12x32x8xf32, #tpu.memory_space<vmem>>, vector<1x32x8xf32>
    %50 = vector.shape_cast %49 : vector<1x32x8xf32> to vector<32x8xf32>
    %cst_38 = arith.constant dense<0.000000e+00> : vector<16x8xf32>
    %51 = tpu.matmul %1, %50, %cst_38 {dimension_numbers = #tpu.dot_dimension_numbers<[1], [0], [0], [1], [0, 0, 1, 1], [], []>} : vector<16x32xf32>, vector<32x8xf32>, vector<16x8xf32> -> vector<16x8xf32>
    %c5_39 = arith.constant 5 : index
    %c0_40 = arith.constant 0 : index
    %c0_41 = arith.constant 0 : index
    %52 = vector.load %arg3[%c5_39, %c0_40, %c0_41] : memref<12x1x8xf32, #tpu.memory_space<vmem>>, vector<1x1x8xf32>
    %53 = vector.shape_cast %52 : vector<1x1x8xf32> to vector<1x8xf32>
    %54 = vector.broadcast %53 : vector<1x8xf32> to vector<16x8xf32>
    %55 = arith.addf %51, %54 : vector<16x8xf32>
    %c9 = arith.constant 9 : index
    %c0_42 = arith.constant 0 : index
    %c0_43 = arith.constant 0 : index
    %56 = vector.load %arg2[%c9, %c0_42, %c0_43] : memref<12x32x8xf32, #tpu.memory_space<vmem>>, vector<1x32x8xf32>
    %57 = vector.shape_cast %56 : vector<1x32x8xf32> to vector<32x8xf32>
    %cst_44 = arith.constant dense<0.000000e+00> : vector<16x8xf32>
    %58 = tpu.matmul %1, %57, %cst_44 {dimension_numbers = #tpu.dot_dimension_numbers<[1], [0], [0], [1], [0, 0, 1, 1], [], []>} : vector<16x32xf32>, vector<32x8xf32>, vector<16x8xf32> -> vector<16x8xf32>
    %c9_45 = arith.constant 9 : index
    %c0_46 = arith.constant 0 : index
    %c0_47 = arith.constant 0 : index
    %59 = vector.load %arg3[%c9_45, %c0_46, %c0_47] : memref<12x1x8xf32, #tpu.memory_space<vmem>>, vector<1x1x8xf32>
    %60 = vector.shape_cast %59 : vector<1x1x8xf32> to vector<1x8xf32>
    %61 = vector.broadcast %60 : vector<1x8xf32> to vector<16x8xf32>
    %62 = arith.addf %58, %61 : vector<16x8xf32>
    %cst_48 = arith.constant dense<0.000000e+00> : vector<16x16xf32>
    %63 = tpu.matmul %48, %55, %cst_48 {dimension_numbers = #tpu.dot_dimension_numbers<[1], [1], [0], [0], [0, 0, 1, 0], [], []>} : vector<16x8xf32>, vector<16x8xf32>, vector<16x16xf32> -> vector<16x16xf32>
    %cst_49 = arith.constant 0.353553385 : f32
    %64 = vector.broadcast %cst_49 : f32 to vector<16x16xf32>
    %65 = arith.mulf %63, %64 : vector<16x16xf32>
    %cst_50 = arith.constant dense<0xFF800000> : vector<16xf32>
    %66 = vector.multi_reduction <maximumf>, %65, %cst_50 [1] : vector<16x16xf32> to vector<16xf32>
    %67 = vector.shape_cast %66 : vector<16xf32> to vector<16x1xf32>
    %68 = vector.broadcast %67 : vector<16x1xf32> to vector<16x16xf32>
    %69 = arith.subf %65, %68 : vector<16x16xf32>
    %70 = math.exp %69 : vector<16x16xf32>
    %cst_51 = arith.constant dense<0.000000e+00> : vector<16xf32>
    %71 = vector.multi_reduction <add>, %70, %cst_51 [1] : vector<16x16xf32> to vector<16xf32>
    %72 = vector.shape_cast %71 : vector<16xf32> to vector<16x1xf32>
    %73 = tpu.reciprocal %72 {approx = true} : vector<16x1xf32> -> vector<16x1xf32>
    %74 = vector.broadcast %73 : vector<16x1xf32> to vector<16x16xf32>
    %75 = arith.mulf %70, %74 : vector<16x16xf32>
    %cst_52 = arith.constant dense<0.000000e+00> : vector<16x8xf32>
    %76 = tpu.matmul %75, %62, %cst_52 {dimension_numbers = #tpu.dot_dimension_numbers<[1], [0], [0], [1], [0, 0, 1, 1], [], []>} : vector<16x16xf32>, vector<16x8xf32>, vector<16x8xf32> -> vector<16x8xf32>
    %c1_53 = arith.constant 1 : index
    %c0_54 = arith.constant 0 : index
    %c0_55 = arith.constant 0 : index
    %77 = vector.load %arg4[%c1_53, %c0_54, %c0_55] : memref<4x8x32xf32, #tpu.memory_space<vmem>>, vector<1x8x32xf32>
    %78 = vector.shape_cast %77 : vector<1x8x32xf32> to vector<8x32xf32>
    %cst_56 = arith.constant dense<0.000000e+00> : vector<16x32xf32>
    %79 = tpu.matmul %76, %78, %cst_56 {dimension_numbers = #tpu.dot_dimension_numbers<[1], [0], [0], [1], [0, 0, 1, 1], [], []>} : vector<16x8xf32>, vector<8x32xf32>, vector<16x32xf32> -> vector<16x32xf32>
    %80 = arith.addf %41, %79 : vector<16x32xf32>
    %c2 = arith.constant 2 : index
    %c0_57 = arith.constant 0 : index
    %c0_58 = arith.constant 0 : index
    %81 = vector.load %arg2[%c2, %c0_57, %c0_58] : memref<12x32x8xf32, #tpu.memory_space<vmem>>, vector<1x32x8xf32>
    %82 = vector.shape_cast %81 : vector<1x32x8xf32> to vector<32x8xf32>
    %cst_59 = arith.constant dense<0.000000e+00> : vector<16x8xf32>
    %83 = tpu.matmul %1, %82, %cst_59 {dimension_numbers = #tpu.dot_dimension_numbers<[1], [0], [0], [1], [0, 0, 1, 1], [], []>} : vector<16x32xf32>, vector<32x8xf32>, vector<16x8xf32> -> vector<16x8xf32>
    %c2_60 = arith.constant 2 : index
    %c0_61 = arith.constant 0 : index
    %c0_62 = arith.constant 0 : index
    %84 = vector.load %arg3[%c2_60, %c0_61, %c0_62] : memref<12x1x8xf32, #tpu.memory_space<vmem>>, vector<1x1x8xf32>
    %85 = vector.shape_cast %84 : vector<1x1x8xf32> to vector<1x8xf32>
    %86 = vector.broadcast %85 : vector<1x8xf32> to vector<16x8xf32>
    %87 = arith.addf %83, %86 : vector<16x8xf32>
    %c6 = arith.constant 6 : index
    %c0_63 = arith.constant 0 : index
    %c0_64 = arith.constant 0 : index
    %88 = vector.load %arg2[%c6, %c0_63, %c0_64] : memref<12x32x8xf32, #tpu.memory_space<vmem>>, vector<1x32x8xf32>
    %89 = vector.shape_cast %88 : vector<1x32x8xf32> to vector<32x8xf32>
    %cst_65 = arith.constant dense<0.000000e+00> : vector<16x8xf32>
    %90 = tpu.matmul %1, %89, %cst_65 {dimension_numbers = #tpu.dot_dimension_numbers<[1], [0], [0], [1], [0, 0, 1, 1], [], []>} : vector<16x32xf32>, vector<32x8xf32>, vector<16x8xf32> -> vector<16x8xf32>
    %c6_66 = arith.constant 6 : index
    %c0_67 = arith.constant 0 : index
    %c0_68 = arith.constant 0 : index
    %91 = vector.load %arg3[%c6_66, %c0_67, %c0_68] : memref<12x1x8xf32, #tpu.memory_space<vmem>>, vector<1x1x8xf32>
    %92 = vector.shape_cast %91 : vector<1x1x8xf32> to vector<1x8xf32>
    %93 = vector.broadcast %92 : vector<1x8xf32> to vector<16x8xf32>
    %94 = arith.addf %90, %93 : vector<16x8xf32>
    %c10 = arith.constant 10 : index
    %c0_69 = arith.constant 0 : index
    %c0_70 = arith.constant 0 : index
    %95 = vector.load %arg2[%c10, %c0_69, %c0_70] : memref<12x32x8xf32, #tpu.memory_space<vmem>>, vector<1x32x8xf32>
    %96 = vector.shape_cast %95 : vector<1x32x8xf32> to vector<32x8xf32>
    %cst_71 = arith.constant dense<0.000000e+00> : vector<16x8xf32>
    %97 = tpu.matmul %1, %96, %cst_71 {dimension_numbers = #tpu.dot_dimension_numbers<[1], [0], [0], [1], [0, 0, 1, 1], [], []>} : vector<16x32xf32>, vector<32x8xf32>, vector<16x8xf32> -> vector<16x8xf32>
    %c10_72 = arith.constant 10 : index
    %c0_73 = arith.constant 0 : index
    %c0_74 = arith.constant 0 : index
    %98 = vector.load %arg3[%c10_72, %c0_73, %c0_74] : memref<12x1x8xf32, #tpu.memory_space<vmem>>, vector<1x1x8xf32>
    %99 = vector.shape_cast %98 : vector<1x1x8xf32> to vector<1x8xf32>
    %100 = vector.broadcast %99 : vector<1x8xf32> to vector<16x8xf32>
    %101 = arith.addf %97, %100 : vector<16x8xf32>
    %cst_75 = arith.constant dense<0.000000e+00> : vector<16x16xf32>
    %102 = tpu.matmul %87, %94, %cst_75 {dimension_numbers = #tpu.dot_dimension_numbers<[1], [1], [0], [0], [0, 0, 1, 0], [], []>} : vector<16x8xf32>, vector<16x8xf32>, vector<16x16xf32> -> vector<16x16xf32>
    %cst_76 = arith.constant 0.353553385 : f32
    %103 = vector.broadcast %cst_76 : f32 to vector<16x16xf32>
    %104 = arith.mulf %102, %103 : vector<16x16xf32>
    %cst_77 = arith.constant dense<0xFF800000> : vector<16xf32>
    %105 = vector.multi_reduction <maximumf>, %104, %cst_77 [1] : vector<16x16xf32> to vector<16xf32>
    %106 = vector.shape_cast %105 : vector<16xf32> to vector<16x1xf32>
    %107 = vector.broadcast %106 : vector<16x1xf32> to vector<16x16xf32>
    %108 = arith.subf %104, %107 : vector<16x16xf32>
    %109 = math.exp %108 : vector<16x16xf32>
    %cst_78 = arith.constant dense<0.000000e+00> : vector<16xf32>
    %110 = vector.multi_reduction <add>, %109, %cst_78 [1] : vector<16x16xf32> to vector<16xf32>
    %111 = vector.shape_cast %110 : vector<16xf32> to vector<16x1xf32>
    %112 = tpu.reciprocal %111 {approx = true} : vector<16x1xf32> -> vector<16x1xf32>
    %113 = vector.broadcast %112 : vector<16x1xf32> to vector<16x16xf32>
    %114 = arith.mulf %109, %113 : vector<16x16xf32>
    %cst_79 = arith.constant dense<0.000000e+00> : vector<16x8xf32>
    %115 = tpu.matmul %114, %101, %cst_79 {dimension_numbers = #tpu.dot_dimension_numbers<[1], [0], [0], [1], [0, 0, 1, 1], [], []>} : vector<16x16xf32>, vector<16x8xf32>, vector<16x8xf32> -> vector<16x8xf32>
    %c2_80 = arith.constant 2 : index
    %c0_81 = arith.constant 0 : index
    %c0_82 = arith.constant 0 : index
    %116 = vector.load %arg4[%c2_80, %c0_81, %c0_82] : memref<4x8x32xf32, #tpu.memory_space<vmem>>, vector<1x8x32xf32>
    %117 = vector.shape_cast %116 : vector<1x8x32xf32> to vector<8x32xf32>
    %cst_83 = arith.constant dense<0.000000e+00> : vector<16x32xf32>
    %118 = tpu.matmul %115, %117, %cst_83 {dimension_numbers = #tpu.dot_dimension_numbers<[1], [0], [0], [1], [0, 0, 1, 1], [], []>} : vector<16x8xf32>, vector<8x32xf32>, vector<16x32xf32> -> vector<16x32xf32>
    %119 = arith.addf %80, %118 : vector<16x32xf32>
    %c3 = arith.constant 3 : index
    %c0_84 = arith.constant 0 : index
    %c0_85 = arith.constant 0 : index
    %120 = vector.load %arg2[%c3, %c0_84, %c0_85] : memref<12x32x8xf32, #tpu.memory_space<vmem>>, vector<1x32x8xf32>
    %121 = vector.shape_cast %120 : vector<1x32x8xf32> to vector<32x8xf32>
    %cst_86 = arith.constant dense<0.000000e+00> : vector<16x8xf32>
    %122 = tpu.matmul %1, %121, %cst_86 {dimension_numbers = #tpu.dot_dimension_numbers<[1], [0], [0], [1], [0, 0, 1, 1], [], []>} : vector<16x32xf32>, vector<32x8xf32>, vector<16x8xf32> -> vector<16x8xf32>
    %c3_87 = arith.constant 3 : index
    %c0_88 = arith.constant 0 : index
    %c0_89 = arith.constant 0 : index
    %123 = vector.load %arg3[%c3_87, %c0_88, %c0_89] : memref<12x1x8xf32, #tpu.memory_space<vmem>>, vector<1x1x8xf32>
    %124 = vector.shape_cast %123 : vector<1x1x8xf32> to vector<1x8xf32>
    %125 = vector.broadcast %124 : vector<1x8xf32> to vector<16x8xf32>
    %126 = arith.addf %122, %125 : vector<16x8xf32>
    %c7 = arith.constant 7 : index
    %c0_90 = arith.constant 0 : index
    %c0_91 = arith.constant 0 : index
    %127 = vector.load %arg2[%c7, %c0_90, %c0_91] : memref<12x32x8xf32, #tpu.memory_space<vmem>>, vector<1x32x8xf32>
    %128 = vector.shape_cast %127 : vector<1x32x8xf32> to vector<32x8xf32>
    %cst_92 = arith.constant dense<0.000000e+00> : vector<16x8xf32>
    %129 = tpu.matmul %1, %128, %cst_92 {dimension_numbers = #tpu.dot_dimension_numbers<[1], [0], [0], [1], [0, 0, 1, 1], [], []>} : vector<16x32xf32>, vector<32x8xf32>, vector<16x8xf32> -> vector<16x8xf32>
    %c7_93 = arith.constant 7 : index
    %c0_94 = arith.constant 0 : index
    %c0_95 = arith.constant 0 : index
    %130 = vector.load %arg3[%c7_93, %c0_94, %c0_95] : memref<12x1x8xf32, #tpu.memory_space<vmem>>, vector<1x1x8xf32>
    %131 = vector.shape_cast %130 : vector<1x1x8xf32> to vector<1x8xf32>
    %132 = vector.broadcast %131 : vector<1x8xf32> to vector<16x8xf32>
    %133 = arith.addf %129, %132 : vector<16x8xf32>
    %c11 = arith.constant 11 : index
    %c0_96 = arith.constant 0 : index
    %c0_97 = arith.constant 0 : index
    %134 = vector.load %arg2[%c11, %c0_96, %c0_97] : memref<12x32x8xf32, #tpu.memory_space<vmem>>, vector<1x32x8xf32>
    %135 = vector.shape_cast %134 : vector<1x32x8xf32> to vector<32x8xf32>
    %cst_98 = arith.constant dense<0.000000e+00> : vector<16x8xf32>
    %136 = tpu.matmul %1, %135, %cst_98 {dimension_numbers = #tpu.dot_dimension_numbers<[1], [0], [0], [1], [0, 0, 1, 1], [], []>} : vector<16x32xf32>, vector<32x8xf32>, vector<16x8xf32> -> vector<16x8xf32>
    %c11_99 = arith.constant 11 : index
    %c0_100 = arith.constant 0 : index
    %c0_101 = arith.constant 0 : index
    %137 = vector.load %arg3[%c11_99, %c0_100, %c0_101] : memref<12x1x8xf32, #tpu.memory_space<vmem>>, vector<1x1x8xf32>
    %138 = vector.shape_cast %137 : vector<1x1x8xf32> to vector<1x8xf32>
    %139 = vector.broadcast %138 : vector<1x8xf32> to vector<16x8xf32>
    %140 = arith.addf %136, %139 : vector<16x8xf32>
    %cst_102 = arith.constant dense<0.000000e+00> : vector<16x16xf32>
    %141 = tpu.matmul %126, %133, %cst_102 {dimension_numbers = #tpu.dot_dimension_numbers<[1], [1], [0], [0], [0, 0, 1, 0], [], []>} : vector<16x8xf32>, vector<16x8xf32>, vector<16x16xf32> -> vector<16x16xf32>
    %cst_103 = arith.constant 0.353553385 : f32
    %142 = vector.broadcast %cst_103 : f32 to vector<16x16xf32>
    %143 = arith.mulf %141, %142 : vector<16x16xf32>
    %cst_104 = arith.constant dense<0xFF800000> : vector<16xf32>
    %144 = vector.multi_reduction <maximumf>, %143, %cst_104 [1] : vector<16x16xf32> to vector<16xf32>
    %145 = vector.shape_cast %144 : vector<16xf32> to vector<16x1xf32>
    %146 = vector.broadcast %145 : vector<16x1xf32> to vector<16x16xf32>
    %147 = arith.subf %143, %146 : vector<16x16xf32>
    %148 = math.exp %147 : vector<16x16xf32>
    %cst_105 = arith.constant dense<0.000000e+00> : vector<16xf32>
    %149 = vector.multi_reduction <add>, %148, %cst_105 [1] : vector<16x16xf32> to vector<16xf32>
    %150 = vector.shape_cast %149 : vector<16xf32> to vector<16x1xf32>
    %151 = tpu.reciprocal %150 {approx = true} : vector<16x1xf32> -> vector<16x1xf32>
    %152 = vector.broadcast %151 : vector<16x1xf32> to vector<16x16xf32>
    %153 = arith.mulf %148, %152 : vector<16x16xf32>
    %cst_106 = arith.constant dense<0.000000e+00> : vector<16x8xf32>
    %154 = tpu.matmul %153, %140, %cst_106 {dimension_numbers = #tpu.dot_dimension_numbers<[1], [0], [0], [1], [0, 0, 1, 1], [], []>} : vector<16x16xf32>, vector<16x8xf32>, vector<16x8xf32> -> vector<16x8xf32>
    %c3_107 = arith.constant 3 : index
    %c0_108 = arith.constant 0 : index
    %c0_109 = arith.constant 0 : index
    %155 = vector.load %arg4[%c3_107, %c0_108, %c0_109] : memref<4x8x32xf32, #tpu.memory_space<vmem>>, vector<1x8x32xf32>
    %156 = vector.shape_cast %155 : vector<1x8x32xf32> to vector<8x32xf32>
    %cst_110 = arith.constant dense<0.000000e+00> : vector<16x32xf32>
    %157 = tpu.matmul %154, %156, %cst_110 {dimension_numbers = #tpu.dot_dimension_numbers<[1], [0], [0], [1], [0, 0, 1, 1], [], []>} : vector<16x8xf32>, vector<8x32xf32>, vector<16x32xf32> -> vector<16x32xf32>
    %158 = arith.addf %119, %157 : vector<16x32xf32>
    %c0_111 = arith.constant 0 : index
    %c0_112 = arith.constant 0 : index
    %159 = vector.load %arg5[%c0_111, %c0_112] : memref<1x32xf32, #tpu.memory_space<vmem>>, vector<1x32xf32>
    %160 = vector.broadcast %159 : vector<1x32xf32> to vector<16x32xf32>
    %161 = arith.addf %158, %160 : vector<16x32xf32>
    %162 = vector.shape_cast %161 : vector<16x32xf32> to vector<1x16x32xf32>
    %c0_113 = arith.constant 0 : index
    %c0_114 = arith.constant 0 : index
    %c0_115 = arith.constant 0 : index
    %163 = vector.load %arg6[%c0_113, %c0_114, %c0_115] : memref<1x16x32xf32, #tpu.memory_space<vmem>>, vector<1x16x32xf32>
    tpu.vector_store %arg6[%c0_113, %c0_114, %c0_115], %162 {strides = array<i32>} : memref<1x16x32xf32, #tpu.memory_space<vmem>>, vector<1x16x32xf32>,
    return
  }
  func.func @transform_0(%arg0: i32) -> (i32, i32, i32) {
    %c0_i32 = arith.constant 0 : i32
    %c0_i32_0 = arith.constant 0 : i32
    %c0_i32_1 = arith.constant 0 : i32
    return %arg0, %c0_i32, %c0_i32_0 : i32, i32, i32
  }
  func.func @transform_1(%arg0: i32) -> (i32, i32, i32) {
    %c0_i32 = arith.constant 0 : i32
    %c0_i32_0 = arith.constant 0 : i32
    %c0_i32_1 = arith.constant 0 : i32
    %c0_i32_2 = arith.constant 0 : i32
    return %c0_i32, %c0_i32_0, %c0_i32_1 : i32, i32, i32
  }
  func.func @transform_2(%arg0: i32) -> (i32, i32, i32) {
    %c0_i32 = arith.constant 0 : i32
    %c0_i32_0 = arith.constant 0 : i32
    %c0_i32_1 = arith.constant 0 : i32
    %c0_i32_2 = arith.constant 0 : i32
    return %c0_i32, %c0_i32_0, %c0_i32_1 : i32, i32, i32
  }
  func.func @transform_3(%arg0: i32) -> (i32, i32, i32) {
    %c0_i32 = arith.constant 0 : i32
    %c0_i32_0 = arith.constant 0 : i32
    %c0_i32_1 = arith.constant 0 : i32
    %c0_i32_2 = arith.constant 0 : i32
    return %c0_i32, %c0_i32_0, %c0_i32_1 : i32, i32, i32
  }
  func.func @transform_4(%arg0: i32) -> (i32, i32) {
    %c0_i32 = arith.constant 0 : i32
    %c0_i32_0 = arith.constant 0 : i32
    %c0_i32_1 = arith.constant 0 : i32
    return %c0_i32, %c0_i32_0 : i32, i32
  }
  func.func @transform_5(%arg0: i32) -> (i32, i32, i32) {
    %c0_i32 = arith.constant 0 : i32
    %c0_i32_0 = arith.constant 0 : i32
    %c0_i32_1 = arith.constant 0 : i32
    return %arg0, %c0_i32, %c0_i32_0 : i32, i32, i32
  }
}

</mosaic_0001>

<bundles_post_ra>
// kernel: tpu_custom_call.1
= control target key start
LH: loop header
LB: loop body
LE: loop exit
PB: predicated region body
PF: predicated region fallthrough
CT: control target
= control target key end

     0   :  { %10 = vsyncpa [#allocation3], 0  ;;  %s3542_s0 = inlined_call_operand.vmem [shape: f32[2,16,32], index: 0, kind: input, shape index: {}]   ;;  %s3543_s1 = inlined_call_operand.vmem [shape: f32[12,32,8], index: 1, kind: input, shape index: {}]   ;;  %s3544_s2 = inlined_call_operand.vmem [shape: f32[12,1,8], index: 2, kind: input, shape index: {}]   ;;  %s3545_s3 = inlined_call_operand.vmem [shape: f32[4,8,32], index: 3, kind: input, shape index: {}]   ;;  %s3546_s4 = inlined_call_operand.vmem [shape: f32[1,32], index: 4, kind: input, shape index: {}]   ;;  %s3547_s5 = inlined_call_operand.hbm [shape: f32[2,16,32], index: 5, kind: output, shape index: {}]  }
   0x1   :  { %12 = vsyncpa [#allocation3 + $0x1], 0  ;;  %s3111_s18 = smov 0   ;;  %s3113_s19 = smov 0  }
   0x2   :  { %s3115_s20 = smov 0   ;;  %s3117_s21 = smov 0  }
   0x3 LB: > { %s3132_s22 = sadd.s32 4294967295, %s3076_s21   ;;  %s2478_s23 = sadd.s32 4294967294, %s3076_s21   ;;  %s3076_s21 = sphi %s3117_s21, %s3553_s21   ;;  %s3072_s20 = sphi %s3115_s20, %s3552_s20   ;;  %s3068_s19 = sphi %s3113_s19, %s3551_s19   ;;  %s3064_s18 = sphi %s3111_s18, %s3550_s18  }
   0x4   : > { %s3136_s24 = sadd.s32 1, %s3076_s21   ;;  %s135_s25 = sadd.s32 1, %s3072_s20 }
   0x5   : > { %s132_s26 = ssub.s32 %s3076_s21, %s3136_s24  ;;  %p145_p0 = scmp.ne.s32.totalorder %s3072_s20, %s3068_s19 }
   0x6   : > { %p133_p1 = scmp.eq.s32.totalorder %s132_s26, 0  ;;  %p146_p2 = scmp.eq.s32.totalorder %s3132_s22, 1 }
   0x7   : > { %p151_p3 = scmp.ne.s32.totalorder %s3068_s19, %s3064_s18  ;;  %p152_p4 = scmp.eq.s32.totalorder %s2478_s23, 1 }
   0x8   : > { %s3147_s27 = scalar_select %p133_p1, %s3072_s20, %s135_s25  }
   0x9   : > { %p3149_p5 = por %p146_p2, %p145_p0  ;;  %p3153_p6 = por %p152_p4, %p151_p3 }
   0xa   : > { %p2481_p7 = scmp.ge.s32.totalorder %s3076_s21, 1  ;;  %p190_p8 = scmp.lt.s32.totalorder %s3076_s21, 3 }
   0xc   : > { %p191_p9 = pnand %p2481_p7, %p190_p8 }
   0xd   : > { %p218_p10 = scmp.lt.s32.totalorder (!%p191_p9), %s3132_s22, 1  ;;  %s215_s10 = sand.u32 (!%p191_p9), 1, %s3068_s19  }
   0xe   : > { %194 = sbr.rel (%p191_p9) target bundleno = 3703 (0xe77), region = 40  ;;  %s2482_s11 = sshll.u32 (!%p191_p9), %s215_s10, 4 }
   0xf   : > { %s217_s14 = scalar_lea.vmem (!%p191_p9), [#allocation2], %s2482_s11  ;;  %s2618_s16 = sshll.u32 (!%p191_p9), %s3132_s22, 8 }
  0x10   : > { %s2416_s15 = sshll.u32 (!%p191_p9), %s217_s14, 4  ;;  %s3496_s25 = scalar_lea.hbm (!%p191_p9), %s3547_s5, %s2618_s16  ;;  %s3498_s15 = int_to_ptr.vmem [resolvable:$true] %s2416_s15 }
  0x11   : > { %s3078_s30 = smov (!%p191_p9), [#allocation2]  }
  0x12   : > { %s3020_s6 = sshll.u32 (!%p191_p9), %s3078_s30, 4  ;;  %s3021_s6 = int_to_ptr.vmem [resolvable:$false] %s3020_s6 }
  0x13   : > { %v2491_v0 = vld [vmem:[%s3543_s1 + $0x98] sm:$0xff]  ;;  %v2490_v1 = vld [vmem:[%s3543_s1 + $0x90] sm:$0xff]  ;;  %v2489_v4 = vld [vmem:[%s3543_s1 + $0x88] sm:$0xff]  ;;  %s219_s17 = scalar_select %p218_p10, %s3132_s22, 1  ;;  %vm236_vm0 = vcmask 261120   ;;  %vm494_vm1 = vcmask 64512  }
  0x14   : > { %v228_v2 = vld [vmem:[%s3543_s1 + $0x18] sm:$0xff]  ;;  %2746 = vmatprep.subr.mxu1 %v2491_v0  ;;  %v227_v3 = vld [vmem:[%s3543_s1 + $0x10] sm:$0xff]  ;;  %v226_v5 = vld [vmem:[%s3543_s1 + $0x8] sm:$0xff]  ;;  %vm584_vm2 = vcmask 130048   ;;  %s3502_s22 = scalar_lea.sflag [#allocation3], %s215_s10  ;;  %p3023_p0 = scmp.lt.s32.totalorder %s3498_s15, %s3021_s6 }
  0x15   : > { %2735 = vmatprep.subr.mxu0 %v228_v2  ;;  %2747 = vmatpush3.msra.mxu1 %v2491_v0  ;;  %v2488_v6 = vld [vmem:[%s3543_s1 + $0x80] sm:$0xff]  ;;  %s2617_s26 = sshll.u32 %s219_s17, 4  ;;  %v2499_v20 = vld [vmem:[%s3543_s1 + $0x118] sm:$0xff]  ;;  %v2498_v21 = vld [vmem:[%s3543_s1 + $0x110] sm:$0xff] }
  0x16   : > { %2736 = vmatpush3.msra.mxu0 %v228_v2  ;;  %2748 = vmatprep.subr.mxu1 %v2490_v1  ;;  %s222_s7 = scalar_lea.vmem %s3542_s0, %s2617_s26  ;;  %v225_v7 = vld [vmem:[%s3543_s1] sm:$0xff]  ;;  %v2497_v22 = vld [vmem:[%s3543_s1 + $0x108] sm:$0xff]  ;;  %v2521_v45 = vld [vmem:[%s3543_s1 + $0xb8] sm:$0xff]  ;;  %s3016_s26 = scalar_lea.vmem %s3498_s15, 256 }
  0x17   : > { %2737 = vmatprep.subr.mxu0 %v227_v3  ;;  %2749 = vmatpush3.msra.mxu1 %v2490_v1  ;;  %v3188_v8 = vld [vmem:[%s222_s7] sm:$0xff]  ;;  %v3190_v9 = vld [vmem:[%s222_s7 + $0x8] sm:$0xff]  ;;  %v2513_v46 = vld [vmem:[%s3543_s1 + $0x38] sm:$0xff]  ;;  %p3017_p11 = scmp.ne.s32.totalorder %s3498_s15, %s3016_s26  ;;  %s3022_s7 = scalar_lea.vmem %s3021_s6, 512 }
  0x18   : > { %2738 = vmatpush3.msra.mxu0 %v227_v3  ;;  %2750 = vmatprep.subr.mxu1 %v2489_v4  ;;  %v2493_v10 = vld [vmem:[%s3544_s2 + $0x4] ss:$0 sm:$0xff]  ;;  %v2485_v15 = vld [vmem:[%s3544_s2] ss:$0 sm:$0xff]  ;;  %v2501_v41 = vld [vmem:[%s3544_s2 + $0x8] ss:$0 sm:$0xff]  ;;  %p3024_p1 = scmp.lt.s32.totalorder %s3022_s7, %s3016_s26 }
  0x19   : > { %2739 = vmatprep.subr.mxu0 %v226_v5  ;;  %2751 = vmatpush3.msra.mxu1 %v2489_v4  ;;  %v2496_v23 = vld [vmem:[%s3543_s1 + $0x100] sm:$0xff]  ;;  %v2512_v47 = vld [vmem:[%s3543_s1 + $0x30] sm:$0xff]  ;;  %v2511_v48 = vld [vmem:[%s3543_s1 + $0x28] sm:$0xff]  ;;  %p3018_p12 = pnand %p3017_p11, %p3149_p5 }
  0x1a   : > { %2740 = vmatpush3.msra.mxu0 %v226_v5  ;;  %2752 = vmatprep.subr.mxu1 %v2488_v6  ;;  %v2510_v49 = vld [vmem:[%s3543_s1 + $0x20] sm:$0xff]  ;;  %v2520_v56 = vld [vmem:[%s3543_s1 + $0xb0] sm:$0xff]  ;;  %v2519_v57 = vld [vmem:[%s3543_s1 + $0xa8] sm:$0xff]  ;;  %p3025_p2 = por %p3024_p1, %p3023_p0 }
  0x1b   : > { %2754 = vmatprep.mubr.msk.f32.mxu1 %vm236_vm0, %v3188_v8  ;;  %2753 = vmatpush3.msra.mxu1 %v2488_v6  ;;  %v2518_v58 = vld [vmem:[%s3543_s1 + $0xa0] sm:$0xff]  ;;  %p3019_p13 = pneg %p3018_p12 }
  0x1c   : > { %2741 = vmatprep.subr.mxu0 %v225_v7  ;;  %2755 = vmatmul.mubr.msk.f32.vlgmr.msra.gmra.mxu1 %vm236_vm0, %v3190_v9  ;;  %v2515_v60 = vld [vmem:[%s3544_s2 + $0x1] ss:$0 sm:$0xff]  ;;  %v2523_v2 = vld [vmem:[%s3544_s2 + $0x5] ss:$0 sm:$0xff] }
  0x1d   : > { %2742 = vmatpush3.msra.mxu0 %v225_v7  ;;  %2743 = vmatprep.mubr.msk.f32.mxu0 %vm236_vm0, %v3188_v8  ;;  %v2529_v7 = vld [vmem:[%s3543_s1 + $0x138] sm:$0xff]  ;;  %p3026_p3 = pnand %p3025_p2, %p3019_p13 }
  0x1e   : > { %2744 = vmatmul.mubr.msk.f32.vlgmr.msra.gmra.mxu0 %vm236_vm0, %v3190_v9  ;;  %2757 = vmatprep.subr.mxu0 %v2499_v20 }
  0x1f   : > { %2765 = vmatprep.mubr.msk.f32.mxu0 %vm236_vm0, %v3188_v8  ;;  %2758 = vmatpush3.msra.mxu0 %v2499_v20 }
  0x20   : > { %2759 = vmatprep.subr.mxu0 %v2498_v21 }
  0x21   : > { %2760 = vmatpush3.msra.mxu0 %v2498_v21 }
  0x22   : > { %2761 = vmatprep.subr.mxu0 %v2497_v22 }
  0x23   : > { %2762 = vmatpush3.msra.mxu0 %v2497_v22 }
  0x24   : > { %2763 = vmatprep.subr.mxu0 %v2496_v23 }
  0x25   : > { %2764 = vmatpush3.msra.mxu0 %v2496_v23 }
  0x26   : > { %2766 = vmatmul.mubr.msk.f32.vlgmr.msra.gmra.mxu0 %vm236_vm0, %v3190_v9 }
  0xdc   : > { %v2756_v11 = vpop.f32.mrf.mxu1 }
  0xdd   : > { %v403_v12 = vadd.f32 %v2756_v11, %v2493_v10  ;;  %v2527_v11 = vld [vmem:[%s3543_s1 + $0x128] sm:$0xff] }
  0xde   : > { %v397_v13 = vpop.f32.mrf.mxu1  ;;  %v2745_v14 = vpop.f32.mrf.mxu0 }
  0xdf   : > { %v398_v16 = vadd.f32 %v2493_v10, %v397_v13  ;;  %2768 = vmatprep.subr.msk.mxu1 %vm494_vm1, %v403_v12  ;;  %v315_v19 = vadd.f32 %v2745_v14, %v2485_v15  ;;  %v2528_v10 = vld [vmem:[%s3543_s1 + $0x130] sm:$0xff] }
  0xe0   : > { %2769 = vmatpush3.xpose.msk.msra.mxu1 %vm494_vm1, %v403_v12  ;;  %v309_v17 = vpop.f32.mrf.mxu0  ;;  %v2526_v12 = vld [vmem:[%s3543_s1 + $0x120] sm:$0xff] }
  0xe1   : > { %v310_v18 = vadd.f32 %v2485_v15, %v309_v17  ;;  %2770 = vmatprep.subr.msk.mxu1 %vm494_vm1, %v398_v16 }
  0xe3   : > { %2772 = vmatprep.mubr.msk.f32.mxu1 %vm494_vm1, %v310_v18 }
  0xe4   : > { %2771 = vmatpush3.xpose.msk.msra.mxu1 %vm494_vm1, %v398_v16 }
  0xe5   : > { %2782 = vmatprep.subr.mxu1 %v2513_v46 }
  0xe6   : > { %v2767_v40 = vpop.f32.mrf.mxu0 }
  0xe7   : > { %2773 = vmatmul.mubr.msk.f32.vlgmr.msra.gmra.mxu1 %vm494_vm1, %v315_v19  ;;  %v491_v42 = vadd.f32 %v2767_v40, %v2501_v41 }
  0xe8   : > { %2790 = vmatprep.mubr.msk.f32.mxu1 %vm236_vm0, %v3188_v8  ;;  %v485_v43 = vpop.f32.mrf.mxu0  ;;  %2783 = vmatpush3.msra.mxu1 %v2513_v46  ;;  %v2548_v46 = vld [vmem:[%s3543_s1 + $0x58] sm:$0xff] }
  0xe9   : > { %v486_v44 = vadd.f32 %v2501_v41, %v485_v43  ;;  %2775 = vmatprep.subr.mxu0 %v491_v42  ;;  %2784 = vmatprep.subr.mxu1 %v2512_v47  ;;  %v2555_v43 = vld [vmem:[%s3543_s1 + $0xd0] sm:$0xff] }
  0xea   : > { %2776 = vmatpush3.msra.mxu0 %v491_v42  ;;  %2785 = vmatpush3.msra.mxu1 %v2512_v47  ;;  %v2556_v42 = vld [vmem:[%s3543_s1 + $0xd8] sm:$0xff] }
  0xeb   : > { %2777 = vmatprep.subr.mxu0 %v486_v44  ;;  %2786 = vmatprep.subr.mxu1 %v2511_v48 }
  0xec   : > { %2778 = vmatpush3.msra.mxu0 %v486_v44  ;;  %2787 = vmatpush3.msra.mxu1 %v2511_v48  ;;  %v2554_v44 = vld [vmem:[%s3543_s1 + $0xc8] sm:$0xff] }
  0xed   : > { %2793 = vmatprep.subr.mxu0 %v2521_v45  ;;  %2788 = vmatprep.subr.mxu1 %v2510_v49 }
  0xee   : > { %2789 = vmatpush3.msra.mxu1 %v2510_v49  ;;  %v2547_v49 = vld [vmem:[%s3543_s1 + $0x50] sm:$0xff] }
  0xef   : > { %2791 = vmatmul.mubr.msk.f32.vlgmr.msra.gmra.mxu1 %vm236_vm0, %v3190_v9  ;;  %2804 = vmatprep.subr.mxu1 %v2529_v7 }
  0xf0   : > { %2812 = vmatprep.mubr.msk.f32.mxu1 %vm236_vm0, %v3188_v8  ;;  %2805 = vmatpush3.msra.mxu1 %v2529_v7 }
  0xf1   : > { %2806 = vmatprep.subr.mxu1 %v2528_v10 }
  0xf2   : > { %2807 = vmatpush3.msra.mxu1 %v2528_v10 }
  0xf3   : > { %2808 = vmatprep.subr.mxu1 %v2527_v11 }
  0xf4   : > { %2809 = vmatpush3.msra.mxu1 %v2527_v11 }
  0xf5   : > { %2810 = vmatprep.subr.mxu1 %v2526_v12 }
  0xf6   : > { %2811 = vmatpush3.msra.mxu1 %v2526_v12 }
  0xf7   : > { %2813 = vmatmul.mubr.msk.f32.vlgmr.msra.gmra.mxu1 %vm236_vm0, %v3190_v9 }
 0x1a7   : > { %v2774_v24 = vpop.f32.mrf.mxu1 }
 0x1a8   : > { %v583_v27 = vmul.f32 0.35355338, %v2774_v24 }
 0x1a9   : > { %v573_v25 = vpop.f32.mrf.mxu1 }
 0x1aa   : > { %v582_v26 = vmul.f32 0.35355338, %v573_v25  ;;  %v588_v29 = vsel %vm584_vm2, %v583_v27, -inf }
 0x1ac   : > { %v585_v28 = vsel %vm584_vm2, %v582_v26, -inf }
 0x1ad   : > { %586 = vmax.xlane.f32.xlu0 %v585_v28 }
 0x1af   : > { %v2792_v59 = vpop.f32.mrf.mxu1 }
 0x1b0   : > { %v774_v61 = vadd.f32 %v2792_v59, %v2515_v60 }
 0x1b1   : > { %589 = vmax.xlane.f32.xlu0 %v588_v29  ;;  %v768_v62 = vpop.f32.mrf.mxu1 }
 0x1b2   : > { %v769_v63 = vadd.f32 %v2515_v60, %v768_v62  ;;  %v2550_v62 = vld [vmem:[%s3544_s2 + $0x2] ss:$0 sm:$0xff] }
 0x1b7   : > { %v2814_v29 = vpop.f32.mrf.mxu1 }
 0x236   : > { %v587_v30 = vpop.xlane.xlu0 %586 }
 0x237   : > { %v591_v31 = vsub.f32 %v582_v26, %v587_v30  ;;  %v2531_v30 = vld [vmem:[%s3544_s2 + $0x9] ss:$0 sm:$0xff] }
 0x239   : > { %v593_v32 = vmul.f32 1.442695, %v591_v31  ;;  %v950_v31 = vadd.f32 %v2814_v29, %v2531_v30  ;;  %v2575_v29 = vld [vmem:[%s3545_s3 + $0x10] sm:$0xff] }
 0x23a   : > { %v590_v33 = vpop.xlane.xlu0 %589 }
 0x23b   : > { %2984 = vpow2.f32 %v593_v32  ;;  %v592_v34 = vsub.f32 %v583_v27, %v590_v33  ;;  %v944_v32 = vpop.f32.mrf.mxu1  ;;  %2822 = vmatprep.subr.mxu1 %v950_v31 }
 0x23c   : > { %v945_v33 = vadd.f32 %v2531_v30, %v944_v32  ;;  %2823 = vmatpush3.msra.mxu1 %v950_v31 }
 0x23d   : > { %v595_v35 = vmul.f32 1.442695, %v592_v34  ;;  %v688_v34 = vld [vmem:[%s3545_s3] sm:$0xff] }
 0x23e   : > { %2824 = vmatprep.subr.mxu1 %v945_v33 }
 0x23f   : > { %2986 = vpow2.f32 %v595_v35  ;;  %2825 = vmatpush3.msra.mxu1 %v945_v33  ;;  %v2540_v35 = vld [vmem:[%s3545_s3 + $0x8] sm:$0xff] }
 0x240   : > { %2834 = vmatprep.subr.mxu1 %v688_v34 }
 0x248   : > { %v2985_v36 = vpop.eup %2984 }
 0x249   : > { %v597_v37 = vsel %vm584_vm2, %v2985_v36, 0.0 }
 0x24a   : > { %598 = vadd.xlane.f32.xlu1 %v597_v37 }
 0x24c   : > { %v2987_v38 = vpop.eup %2986 }
 0x24d   : > { %v600_v39 = vsel %vm584_vm2, %v2987_v38, 0.0 }
 0x24e   : > { %601 = vadd.xlane.f32.xlu1 %v600_v39 }
 0x2d3   : > { %v599_v50 = vpop.xlane.xlu1 %598 }
 0x2d4   : > { %2988 = vrcp.f32 %v599_v50  ;;  %v2546_v50 = vld [vmem:[%s3543_s1 + $0x48] sm:$0xff] }
 0x2d7   : > { %v602_v51 = vpop.xlane.xlu1 %601 }
 0x2d8   : > { %2990 = vrcp.f32 %v602_v51 }
 0x2e1   : > { %v2989_v52 = vpop.eup %2988 }
 0x2e2   : > { %v605_v53 = vmul.f32 %v2989_v52, %v2985_v36  ;;  %v2545_v52 = vld [vmem:[%s3543_s1 + $0x40] sm:$0xff] }
 0x2e4   : > { %2779 = vmatprep.mubr.msk.f32.mxu0 %vm584_vm2, %v605_v53 }
 0x2e5   : > { %v2991_v54 = vpop.eup %2990 }
 0x2e6   : > { %v606_v55 = vmul.f32 %v2991_v54, %v2987_v38  ;;  %v2558_v54 = vld [vmem:[%s3544_s2 + $0x6] ss:$0 sm:$0xff] }
 0x2e8   : > { %2780 = vmatmul.mubr.msk.f32.vlgmr.msra.gmra.mxu0 %vm584_vm2, %v606_v55 }
 0x2e9   : > { %2794 = vmatpush3.msra.mxu0 %v2521_v45  ;;  %2801 = vmatprep.mubr.msk.f32.mxu0 %vm236_vm0, %v3188_v8  ;;  %v2553_v45 = vld [vmem:[%s3543_s1 + $0xc0] sm:$0xff] }
 0x2ea   : > { %2795 = vmatprep.subr.mxu0 %v2520_v56 }
 0x2eb   : > { %2796 = vmatpush3.msra.mxu0 %v2520_v56 }
 0x2ec   : > { %2797 = vmatprep.subr.mxu0 %v2519_v57 }
 0x2ed   : > { %2798 = vmatpush3.msra.mxu0 %v2519_v57 }
 0x2ee   : > { %2799 = vmatprep.subr.mxu0 %v2518_v58 }
 0x2ef   : > { %2800 = vmatpush3.msra.mxu0 %v2518_v58 }
 0x2f0   : > { %2802 = vmatmul.mubr.msk.f32.vlgmr.msra.gmra.mxu0 %vm236_vm0, %v3190_v9 }
 0x2f1   : > { %2819 = vmatprep.mubr.msk.f32.mxu0 %vm494_vm1, %v769_v63 }
 0x3a8   : > { %v3275_v0 = vpop.f32.mrf.mxu0 }
 0x3aa   : > { %v3277_v1 = vpop.f32.mrf.mxu0 }
 0x3b0   : > { %v2803_v3 = vpop.f32.mrf.mxu0 }
 0x3b1   : > { %v862_v4 = vadd.f32 %v2803_v3, %v2523_v2  ;;  %v2563_v3 = vld [vmem:[%s3543_s1 + $0x150] sm:$0xff] }
 0x3b2   : > { %v856_v5 = vpop.f32.mrf.mxu0 }
 0x3b3   : > { %v857_v6 = vadd.f32 %v2523_v2, %v856_v5  ;;  %2815 = vmatprep.subr.msk.mxu0 %vm494_vm1, %v862_v4  ;;  %v2564_v2 = vld [vmem:[%s3543_s1 + $0x158] sm:$0xff]  ;;  %v2561_v5 = vld [vmem:[%s3543_s1 + $0x140] sm:$0xff] }
 0x3b4   : > { %2816 = vmatpush3.xpose.msk.msra.mxu0 %vm494_vm1, %v862_v4  ;;  %v2562_v4 = vld [vmem:[%s3543_s1 + $0x148] sm:$0xff] }
 0x3b5   : > { %2817 = vmatprep.subr.msk.mxu0 %vm494_vm1, %v857_v6 }
 0x3b8   : > { %2818 = vmatpush3.xpose.msk.msra.mxu0 %vm494_vm1, %v857_v6 }
 0x3b9   : > { %2829 = vmatprep.subr.mxu0 %v2540_v35 }
 0x3bb   : > { %2820 = vmatmul.mubr.msk.f32.vlgmr.msra.gmra.mxu0 %vm494_vm1, %v774_v61 }
 0x3bc   : > { %2830 = vmatpush3.msra.mxu0 %v2540_v35 }
 0x3bd   : > { %2839 = vmatprep.subr.mxu0 %v2548_v46 }
 0x47b   : > { %v2821_v13 = vpop.f32.mrf.mxu0 }
 0x47c   : > { %v1041_v14 = vmul.f32 0.35355338, %v2821_v13 }
 0x47d   : > { %v1031_v15 = vpop.f32.mrf.mxu0 }
 0x47e   : > { %v1040_v16 = vmul.f32 0.35355338, %v1031_v15  ;;  %v1045_v17 = vsel %vm584_vm2, %v1041_v14, -inf }
 0x47f   : > { %1046 = vmax.xlane.f32.xlu1 %v1045_v17 }
 0x480   : > { %v1042_v18 = vsel %vm584_vm2, %v1040_v16, -inf }
 0x481   : > { %1043 = vmax.xlane.f32.xlu0 %v1042_v18 }
 0x508   : > { %v1047_v19 = vpop.xlane.xlu1 %1046 }
 0x509   : > { %v1049_v20 = vsub.f32 %v1041_v14, %v1047_v19 }
 0x50a   : > { %v1044_v21 = vpop.xlane.xlu0 %1043 }
 0x50b   : > { %v1052_v22 = vmul.f32 1.442695, %v1049_v20  ;;  %v1048_v23 = vsub.f32 %v1040_v16, %v1044_v21 }
 0x50d   : > { %2992 = vpow2.f32 %v1052_v22  ;;  %v1050_v24 = vmul.f32 1.442695, %v1048_v23 }
 0x50f   : > { %2994 = vpow2.f32 %v1050_v24 }
 0x51a   : > { %v2993_v25 = vpop.eup %2992 }
 0x51b   : > { %v1057_v26 = vsel %vm584_vm2, %v2993_v25, 0.0 }
 0x51c   : > { %v2995_v27 = vpop.eup %2994  ;;  %1058 = vadd.xlane.f32.xlu1 %v1057_v26 }
 0x51d   : > { %v1054_v28 = vsel %vm584_vm2, %v2995_v27, 0.0 }
 0x51e   : > { %1055 = vadd.xlane.f32.xlu0 %v1054_v28 }
 0x5a5   : > { %v1059_v36 = vpop.xlane.xlu1 %1058 }
 0x5a6   : > { %2996 = vrcp.f32 %v1059_v36  ;;  %v2589_v36 = vld [vmem:[%s3543_s1 + $0xf8] sm:$0xff] }
 0x5a7   : > { %v1056_v37 = vpop.xlane.xlu0 %1055 }
 0x5a8   : > { %2998 = vrcp.f32 %v1056_v37  ;;  %v2581_v37 = vld [vmem:[%s3543_s1 + $0x78] sm:$0xff] }
 0x5b3   : > { %v2997_v38 = vpop.eup %2996 }
 0x5b4   : > { %v1063_v41 = vmul.f32 %v2997_v38, %v2993_v25  ;;  %v2566_v25 = vld [vmem:[%s3544_s2 + $0xa] ss:$0 sm:$0xff]  ;;  %v2580_v38 = vld [vmem:[%s3543_s1 + $0x70] sm:$0xff] }
 0x5b5   : > { %v2999_v39 = vpop.eup %2998 }
 0x5b6   : > { %v1062_v40 = vmul.f32 %v2999_v39, %v2995_v27  ;;  %v2579_v39 = vld [vmem:[%s3543_s1 + $0x68] sm:$0xff] }
 0x5b8   : > { %2826 = vmatprep.mubr.msk.f32.mxu1 %vm584_vm2, %v1062_v40  ;;  %v2578_v40 = vld [vmem:[%s3543_s1 + $0x60] sm:$0xff] }
 0x5b9   : > { %2827 = vmatmul.mubr.msk.f32.vlgmr.msra.gmra.mxu1 %vm584_vm2, %v1063_v41 }
 0x5ba   : > { %2836 = vmatprep.mubr.msk.f32.mxu1 %vm494_vm1, %v3277_v1  ;;  %2835 = vmatpush3.msra.mxu1 %v688_v34 }
 0x5bb   : > { %2850 = vmatprep.subr.mxu1 %v2556_v42 }
 0x5bd   : > { %2837 = vmatmul.mubr.msk.f32.vlgmr.msra.gmra.mxu1 %vm494_vm1, %v3275_v0 }
 0x5be   : > { %2851 = vmatpush3.msra.mxu1 %v2556_v42  ;;  %2858 = vmatprep.mubr.msk.f32.mxu1 %vm236_vm0, %v3188_v8 }
 0x5bf   : > { %2852 = vmatprep.subr.mxu1 %v2555_v43 }
 0x5c0   : > { %2853 = vmatpush3.msra.mxu1 %v2555_v43  ;;  %v2588_v43 = vld [vmem:[%s3543_s1 + $0xf0] sm:$0xff] }
 0x5c1   : > { %2854 = vmatprep.subr.mxu1 %v2554_v44 }
 0x5c2   : > { %2855 = vmatpush3.msra.mxu1 %v2554_v44  ;;  %v2587_v44 = vld [vmem:[%s3543_s1 + $0xe8] sm:$0xff] }
 0x5c3   : > { %2856 = vmatprep.subr.mxu1 %v2553_v45 }
 0x5c4   : > { %2857 = vmatpush3.msra.mxu1 %v2553_v45  ;;  %v2586_v45 = vld [vmem:[%s3543_s1 + $0xe0] sm:$0xff] }
 0x5c5   : > { %2859 = vmatmul.mubr.msk.f32.vlgmr.msra.gmra.mxu1 %vm236_vm0, %v3190_v9 }
 0x679   : > { %v2828_v47 = vpop.f32.mrf.mxu1 }
 0x67b   : > { %v1136_v48 = vpop.f32.mrf.mxu1 }
 0x67c   : > { %2831 = vmatprep.mubr.msk.f32.mxu0 %vm494_vm1, %v1136_v48 }
 0x67d   : > { %2832 = vmatmul.mubr.msk.f32.vlgmr.msra.gmra.mxu0 %vm494_vm1, %v2828_v47  ;;  %v3349_v51 = vpop.f32.mrf.mxu1  ;;  %v2583_v47 = vld [vmem:[%s3544_s2 + $0x3] ss:$0 sm:$0xff] }
 0x67e   : > { %2840 = vmatpush3.msra.mxu0 %v2548_v46  ;;  %2847 = vmatprep.mubr.msk.f32.mxu0 %vm236_vm0, %v3188_v8 }
 0x67f   : > { %2841 = vmatprep.subr.mxu0 %v2547_v49  ;;  %v3354_v53 = vpop.f32.mrf.mxu1 }
 0x680   : > { %2842 = vmatpush3.msra.mxu0 %v2547_v49 }
 0x681   : > { %2843 = vmatprep.subr.mxu0 %v2546_v50 }
 0x682   : > { %2844 = vmatpush3.msra.mxu0 %v2546_v50 }
 0x683   : > { %2845 = vmatprep.subr.mxu0 %v2545_v52 }
 0x684   : > { %2846 = vmatpush3.msra.mxu0 %v2545_v52 }
 0x685   : > { %2848 = vmatmul.mubr.msk.f32.vlgmr.msra.gmra.mxu0 %vm236_vm0, %v3190_v9  ;;  %v2860_v55 = vpop.f32.mrf.mxu1  ;;  %2861 = vmatprep.subr.mxu0 %v2564_v2 }
 0x686   : > { %v1482_v56 = vadd.f32 %v2860_v55, %v2558_v54  ;;  %2869 = vmatprep.mubr.msk.f32.mxu0 %vm236_vm0, %v3188_v8  ;;  %2862 = vmatpush3.msra.mxu0 %v2564_v2 }
 0x687   : > { %v1476_v57 = vpop.f32.mrf.mxu1  ;;  %2863 = vmatprep.subr.mxu0 %v2563_v3 }
 0x688   : > { %2872 = vmatprep.subr.msk.mxu1 %vm494_vm1, %v1482_v56  ;;  %v1477_v58 = vadd.f32 %v2558_v54, %v1476_v57  ;;  %2864 = vmatpush3.msra.mxu0 %v2563_v3 }
 0x689   : > { %2873 = vmatpush3.xpose.msk.msra.mxu1 %vm494_vm1, %v1482_v56  ;;  %2865 = vmatprep.subr.mxu0 %v2562_v4 }
 0x68a   : > { %2874 = vmatprep.subr.msk.mxu1 %vm494_vm1, %v1477_v58  ;;  %2866 = vmatpush3.msra.mxu0 %v2562_v4 }
 0x68b   : > { %2867 = vmatprep.subr.mxu0 %v2561_v5 }
 0x68c   : > { %2868 = vmatpush3.msra.mxu0 %v2561_v5 }
 0x68d   : > { %2875 = vmatpush3.xpose.msk.msra.mxu1 %vm494_vm1, %v1477_v58  ;;  %2870 = vmatmul.mubr.msk.f32.vlgmr.msra.gmra.mxu0 %vm236_vm0, %v3190_v9  ;;  %v2591_v58 = vld [vmem:[%s3544_s2 + $0x7] ss:$0 sm:$0xff] }
 0x68e   : > { %2886 = vmatprep.subr.mxu1 %v2575_v29 }
 0x73d   : > { %v3367_v59 = vpop.f32.mrf.mxu0 }
 0x73e   : > { %v1306_v50 = vadd.f32 %v3349_v51, %v3367_v59  ;;  %v2597_v51 = vld [vmem:[%s3543_s1 + $0x178] sm:$0xff]  ;;  %v2595_v59 = vld [vmem:[%s3543_s1 + $0x168] sm:$0xff] }
 0x73f   : > { %v3369_v60 = vpop.f32.mrf.mxu0 }
 0x740   : > { %v1301_v54 = vadd.f32 %v3354_v53, %v3369_v60  ;;  %v2596_v53 = vld [vmem:[%s3543_s1 + $0x170] sm:$0xff]  ;;  %v2594_v60 = vld [vmem:[%s3543_s1 + $0x160] sm:$0xff] }
 0x745   : > { %v2849_v61 = vpop.f32.mrf.mxu0 }
 0x746   : > { %v1394_v1 = vadd.f32 %v2849_v61, %v2550_v62 }
 0x747   : > { %v1388_v63 = vpop.f32.mrf.mxu0 }
 0x748   : > { %v1389_v0 = vadd.f32 %v2550_v62, %v1388_v63 }
 0x74a   : > { %2876 = vmatprep.mubr.msk.f32.mxu1 %vm494_vm1, %v1389_v0 }
 0x74b   : > { %2877 = vmatmul.mubr.msk.f32.vlgmr.msra.gmra.mxu1 %vm494_vm1, %v1394_v1 }
 0x74c   : > { %2887 = vmatpush3.msra.mxu1 %v2575_v29 }
 0x74d   : > { %v2871_v24 = vpop.f32.mrf.mxu0  ;;  %2902 = vmatprep.subr.mxu1 %v2589_v36 }
 0x74e   : > { %v1570_v26 = vadd.f32 %v2871_v24, %v2566_v25 }
 0x74f   : > { %v1564_v27 = vpop.f32.mrf.mxu0 }
 0x750   : > { %v1565_v28 = vadd.f32 %v2566_v25, %v1564_v27  ;;  %2879 = vmatprep.subr.mxu0 %v1570_v26 }
 0x751   : > { %2880 = vmatpush3.msra.mxu0 %v1570_v26 }
 0x752   : > { %2881 = vmatprep.subr.mxu0 %v1565_v28 }
 0x753   : > { %2882 = vmatpush3.msra.mxu0 %v1565_v28 }
 0x754   : > { %2891 = vmatprep.subr.mxu0 %v2581_v37 }
 0x80b   : > { %v2878_v6 = vpop.f32.mrf.mxu1 }
 0x80c   : > { %v1661_v7 = vmul.f32 0.35355338, %v2878_v6 }
 0x80d   : > { %v1651_v10 = vpop.f32.mrf.mxu1 }
 0x80e   : > { %v1660_v11 = vmul.f32 0.35355338, %v1651_v10  ;;  %v1665_v12 = vsel %vm584_vm2, %v1661_v7, -inf }
 0x80f   : > { %1666 = vmax.xlane.f32.xlu1 %v1665_v12 }
 0x810   : > { %v1662_v13 = vsel %vm584_vm2, %v1660_v11, -inf }
 0x811   : > { %1663 = vmax.xlane.f32.xlu0 %v1662_v13 }
 0x898   : > { %v1667_v14 = vpop.xlane.xlu1 %1666 }
 0x899   : > { %v1669_v15 = vsub.f32 %v1661_v7, %v1667_v14 }
 0x89a   : > { %v1664_v16 = vpop.xlane.xlu0 %1663 }
 0x89b   : > { %v1672_v17 = vmul.f32 1.442695, %v1669_v15  ;;  %v1668_v18 = vsub.f32 %v1660_v11, %v1664_v16 }
 0x89d   : > { %3000 = vpow2.f32 %v1672_v17  ;;  %v1670_v19 = vmul.f32 1.442695, %v1668_v18 }
 0x89f   : > { %3002 = vpow2.f32 %v1670_v19  ;;  %v2599_v19 = vld [vmem:[%s3544_s2 + $0xb] ss:$0 sm:$0xff] }
 0x8aa   : > { %v3001_v20 = vpop.eup %3000 }
 0x8ab   : > { %v1677_v21 = vsel %vm584_vm2, %v3001_v20, 0.0 }
 0x8ac   : > { %v3003_v22 = vpop.eup %3002  ;;  %1678 = vadd.xlane.f32.xlu1 %v1677_v21 }
 0x8ad   : > { %v1674_v23 = vsel %vm584_vm2, %v3003_v22, 0.0 }
 0x8ae   : > { %1675 = vadd.xlane.f32.xlu0 %v1674_v23  ;;  %v2608_v23 = vld [vmem:[%s3545_s3 + $0x18] sm:$0xff] }
 0x935   : > { %v1679_v30 = vpop.xlane.xlu1 %1678 }
 0x936   : > { %3004 = vrcp.f32 %v1679_v30 }
 0x937   : > { %v1676_v31 = vpop.xlane.xlu0 %1675 }
 0x938   : > { %3006 = vrcp.f32 %v1676_v31 }
 0x943   : > { %v3005_v32 = vpop.eup %3004 }
 0x944   : > { %v1683_v35 = vmul.f32 %v3005_v32, %v3001_v20 }
 0x945   : > { %v3007_v33 = vpop.eup %3006 }
 0x946   : > { %v1682_v34 = vmul.f32 %v3007_v33, %v3003_v22  ;;  %v2611_v33 = vld [vmem:[%s3546_s4] ss:$0 sm:$0xff] }
 0x948   : > { %2883 = vmatprep.mubr.msk.f32.mxu0 %vm584_vm2, %v1682_v34 }
 0x949   : > { %2884 = vmatmul.mubr.msk.f32.vlgmr.msra.gmra.mxu0 %vm584_vm2, %v1683_v35 }
 0x94a   : > { %2899 = vmatprep.mubr.msk.f32.mxu0 %vm236_vm0, %v3188_v8  ;;  %2892 = vmatpush3.msra.mxu0 %v2581_v37 }
 0x94b   : > { %2893 = vmatprep.subr.mxu0 %v2580_v38 }
 0x94c   : > { %2894 = vmatpush3.msra.mxu0 %v2580_v38 }
 0x94d   : > { %2895 = vmatprep.subr.mxu0 %v2579_v39 }
 0x94e   : > { %2896 = vmatpush3.msra.mxu0 %v2579_v39 }
 0x94f   : > { %2897 = vmatprep.subr.mxu0 %v2578_v40 }
 0x950   : > { %2898 = vmatpush3.msra.mxu0 %v2578_v40 }
 0x951   : > { %2900 = vmatmul.mubr.msk.f32.vlgmr.msra.gmra.mxu0 %vm236_vm0, %v3190_v9  ;;  %2913 = vmatprep.subr.mxu0 %v2597_v51 }
 0x952   : > { %2921 = vmatprep.mubr.msk.f32.mxu0 %vm236_vm0, %v3188_v8  ;;  %2914 = vmatpush3.msra.mxu0 %v2597_v51 }
 0x953   : > { %2915 = vmatprep.subr.mxu0 %v2596_v53 }
 0x954   : > { %2916 = vmatpush3.msra.mxu0 %v2596_v53 }
 0x955   : > { %2917 = vmatprep.subr.mxu0 %v2595_v59 }
 0x956   : > { %2918 = vmatpush3.msra.mxu0 %v2595_v59 }
 0x957   : > { %2919 = vmatprep.subr.mxu0 %v2594_v60 }
 0x958   : > { %2920 = vmatpush3.msra.mxu0 %v2594_v60 }
 0x959   : > { %2922 = vmatmul.mubr.msk.f32.vlgmr.msra.gmra.mxu0 %vm236_vm0, %v3190_v9 }
 0xa09   : > { %v2885_v41 = vpop.f32.mrf.mxu0 }
 0xa0b   : > { %v1756_v42 = vpop.f32.mrf.mxu0 }
 0xa0c   : > { %2888 = vmatprep.mubr.msk.f32.mxu1 %vm494_vm1, %v1756_v42 }
 0xa0d   : > { %2889 = vmatmul.mubr.msk.f32.vlgmr.msra.gmra.mxu1 %vm494_vm1, %v2885_v41 }
 0xa0e   : > { %2903 = vmatpush3.msra.mxu1 %v2589_v36  ;;  %2910 = vmatprep.mubr.msk.f32.mxu1 %vm236_vm0, %v3188_v8 }
 0xa0f   : > { %2904 = vmatprep.subr.mxu1 %v2588_v43 }
 0xa10   : > { %2905 = vmatpush3.msra.mxu1 %v2588_v43 }
 0xa11   : > { %2906 = vmatprep.subr.mxu1 %v2587_v44  ;;  %v2901_v46 = vpop.f32.mrf.mxu0 }
 0xa12   : > { %2907 = vmatpush3.msra.mxu1 %v2587_v44  ;;  %v1935_v48 = vadd.f32 %v2901_v46, %v2583_v47 }
 0xa13   : > { %2908 = vmatprep.subr.mxu1 %v2586_v45  ;;  %v1929_v8 = vpop.f32.mrf.mxu0 }
 0xa14   : > { %2909 = vmatpush3.msra.mxu1 %v2586_v45  ;;  %v1930_v49 = vadd.f32 %v2583_v47, %v1929_v8 }
 0xa15   : > { %2911 = vmatmul.mubr.msk.f32.vlgmr.msra.gmra.mxu1 %vm236_vm0, %v3190_v9 }
 0xa16   : > { %2928 = vmatprep.mubr.msk.f32.mxu1 %vm494_vm1, %v1930_v49 }
 0xa19   : > { %v2923_v18 = vpop.f32.mrf.mxu0 }
 0xa1a   : > { %v2111_v20 = vadd.f32 %v2923_v18, %v2599_v19 }
 0xa1b   : > { %v2105_v21 = vpop.f32.mrf.mxu0 }
 0xa1c   : > { %v2106_v22 = vadd.f32 %v2599_v19, %v2105_v21  ;;  %2931 = vmatprep.subr.mxu0 %v2111_v20 }
 0xa1d   : > { %2932 = vmatpush3.msra.mxu0 %v2111_v20 }
 0xa1e   : > { %2933 = vmatprep.subr.mxu0 %v2106_v22 }
 0xa1f   : > { %2934 = vmatpush3.msra.mxu0 %v2106_v22 }
 0xacd   : > { %v2890_v52 = vpop.f32.mrf.mxu1 }
 0xace   : > { %v3446_v55 = vadd.f32 %v2890_v52, %v1306_v50 }
 0xacf   : > { %v1839_v56 = vpop.f32.mrf.mxu1 }
 0xad0   : > { %v3448_v57 = vadd.f32 %v1839_v56, %v1301_v54 }
 0xad5   : > { %v2912_v61 = vpop.f32.mrf.mxu1 }
 0xad6   : > { %v2023_v62 = vadd.f32 %v2912_v61, %v2591_v58 }
 0xad7   : > { %v2017_v63 = vpop.f32.mrf.mxu1 }
 0xad8   : > { %v2018_v0 = vadd.f32 %v2591_v58, %v2017_v63  ;;  %2924 = vmatprep.subr.msk.mxu1 %vm494_vm1, %v2023_v62 }
 0xad9   : > { %2925 = vmatpush3.xpose.msk.msra.mxu1 %vm494_vm1, %v2023_v62 }
 0xada   : > { %2926 = vmatprep.subr.msk.mxu1 %vm494_vm1, %v2018_v0 }
 0xadd   : > { %2927 = vmatpush3.xpose.msk.msra.mxu1 %vm494_vm1, %v2018_v0 }
 0xade   : > { %2938 = vmatprep.subr.mxu1 %v2608_v23 }
 0xae0   : > { %2929 = vmatmul.mubr.msk.f32.vlgmr.msra.gmra.mxu1 %vm494_vm1, %v1935_v48 }
 0xae1   : > { %2939 = vmatpush3.msra.mxu1 %v2608_v23 }
 0xba0   : > { %v2930_v1 = vpop.f32.mrf.mxu1 }
 0xba1   : > { %v2202_v2 = vmul.f32 0.35355338, %v2930_v1 }
 0xba2   : > { %v2192_v3 = vpop.f32.mrf.mxu1 }
 0xba3   : > { %v2201_v4 = vmul.f32 0.35355338, %v2192_v3  ;;  %v2206_v5 = vsel %vm584_vm2, %v2202_v2, -inf }
 0xba4   : > { %2207 = vmax.xlane.f32.xlu1 %v2206_v5 }
 0xba5   : > { %v2203_v6 = vsel %vm584_vm2, %v2201_v4, -inf }
 0xba6   : > { %2204 = vmax.xlane.f32.xlu0 %v2203_v6 }
 0xc2d   : > { %v2208_v7 = vpop.xlane.xlu1 %2207 }
 0xc2e   : > { %v2210_v10 = vsub.f32 %v2202_v2, %v2208_v7 }
 0xc2f   : > { %v2205_v11 = vpop.xlane.xlu0 %2204 }
 0xc30   : > { %v2213_v12 = vmul.f32 1.442695, %v2210_v10  ;;  %v2209_v13 = vsub.f32 %v2201_v4, %v2205_v11 }
 0xc32   : > { %3008 = vpow2.f32 %v2213_v12  ;;  %v2211_v14 = vmul.f32 1.442695, %v2209_v13 }
 0xc34   : > { %3010 = vpow2.f32 %v2211_v14 }
 0xc3f   : > { %v3009_v15 = vpop.eup %3008 }
 0xc40   : > { %v2218_v9 = vsel %vm584_vm2, %v3009_v15, 0.0 }
 0xc41   : > { %v3011_v16 = vpop.eup %3010  ;;  %2219 = vadd.xlane.f32.xlu1 %v2218_v9 }
 0xc42   : > { %v2215_v17 = vsel %vm584_vm2, %v3011_v16, 0.0 }
 0xc43   : > { %2216 = vadd.xlane.f32.xlu0 %v2215_v17 }
 0xcca   : > { %v2220_v24 = vpop.xlane.xlu1 %2219 }
 0xccb   : > { %3012 = vrcp.f32 %v2220_v24 }
 0xccc   : > { %v2217_v25 = vpop.xlane.xlu0 %2216 }
 0xccd   : > { %3014 = vrcp.f32 %v2217_v25 }
 0xcd8   : > { %v3013_v26 = vpop.eup %3012 }
 0xcd9   : > { %v2224_v29 = vmul.f32 %v3013_v26, %v3009_v15 }
 0xcda   : > { %v3015_v27 = vpop.eup %3014 }
 0xcdb   : > { %v2223_v28 = vmul.f32 %v3015_v27, %v3011_v16 }
 0xcdd   : > { %2935 = vmatprep.mubr.msk.f32.mxu0 %vm584_vm2, %v2223_v28 }
 0xcde   : > { %2936 = vmatmul.mubr.msk.f32.vlgmr.msra.gmra.mxu0 %vm584_vm2, %v2224_v29 }
 0xd9e   : > { %v2937_v30 = vpop.f32.mrf.mxu0 }
 0xda0   : > { %v2297_v31 = vpop.f32.mrf.mxu0 }
 0xda1   : > { %2940 = vmatprep.mubr.msk.f32.mxu1 %vm494_vm1, %v2297_v31 }
 0xda2   : > { %2941 = vmatmul.mubr.msk.f32.vlgmr.msra.gmra.mxu1 %vm494_vm1, %v2937_v30 }
 0xe62   : > { %v2942_v32 = vpop.f32.mrf.mxu1 }
 0xe63   : > { %v2390_v34 = vadd.f32 %v2942_v32, %v3446_v55 }
 0xe64   : > { %v2380_v35 = vpop.f32.mrf.mxu1 }
 0xe65   : > { %v2399_v36 = vadd.f32 %v2611_v33, %v2390_v34  ;;  %v2389_v37 = vadd.f32 %v2380_v35, %v3448_v57 }
 0xe67   : > { %2401 = vst.msk [vmem:[%s217_s14 + $0x8] sm:$0xff] %vm236_vm0, %v2399_v36  ;;  %v2398_v38 = vadd.f32 %v2611_v33, %v2389_v37 }
 0xe69   : > { %2400 = vst.msk [vmem:[%s217_s14] sm:$0xff] %vm236_vm0, %v2398_v38 }
 0xe6a   : > { %3029 = shalt.err (!%p3026_p3)
}
 0xe6b   : > { %s3030_s8 = scalar_lea.hbm %s3496_s25, 256  ;;  %s3034_s11 = scalar_lea.hbm %s3547_s5, 512 }
 0xe6c   : > { %p3031_p4 = scmp.ne.s32.totalorder %s3496_s25, %s3030_s8  ;;  %p3035_p9 = scmp.lt.s32.totalorder %s3496_s25, %s3547_s5 }
 0xe6d   : > { %p3036_p10 = scmp.lt.s32.totalorder %s3034_s11, %s3030_s8 }
 0xe6e   : > { %p3032_p7 = pnand %p3031_p4, %p3149_p5 }
 0xe6f   : > { %p3037_p11 = por %p3036_p10, %p3035_p9 }
 0xe70   : > { %p3033_p8 = pneg %p3032_p7 }
 0xe72   : > { %p3038_p12 = pnand %p3037_p11, %p3033_p8 }
 0xe74   : > { %3041 = shalt.err (!%p3038_p12)
}
 0xe75   : > { %s3079_s14 = smov 128   ;;  %s3080_s16 = smov 8  }
 0xe76   : > { %2943 = dma.vmem_to_hbm [thread:$0]  (%p3149_p5), %s3498_s15, 256, %s3496_s25, %s3502_s22, %s3079_s14, %s3079_s14, %s3080_s16  }
 0xe77 PF: > { %p2949_p13 = scmp.ge.s32.totalorder %s3076_s21, 2  ;;  %s2431_s17 = sand.u32 1, %s3064_s18  }
 0xe78   : > { %s2432_s23 = scalar_lea.sflag [#allocation3], %s2431_s17 }
 0xe79   : > { %p2946_p0 = pnand %p2949_p13, %p3153_p6 }
 0xe7b   : > { %p2947_p1 = pneg %p2946_p0 }
 0xe7d   : > { %3059 = dma.done.wait (%p2947_p1), %s2432_s23, 256  }
 0xe7e   : > { %3061 = vsyncadd (%p2947_p1), %s2432_s23, 4294967040  ;;  %p15_p2 = scmp.ge.s32.totalorder %s3136_s24, 4   ;;  %s3550_s18 = smov %s3068_s19 }
 0xe7f   : > { %s3551_s19 = smov %s3072_s20  ;;  %s3552_s20 = smov %s3147_s27 }
 0xe80   : > { %s3553_s21 = smov %s3136_s24  ;;  %17 = sbr.rel (!%p15_p2) target bundleno = 3 (0x3), region = 100 }
 0xe85   :  { %2437 = vsyncpa [#allocation3], 1 }
 0xe86   :  { %2439 = vsyncpa [#allocation3 + $0x1], 1 }

</bundles_post_ra>
